<compile_context>
chip_gen: v7x
topology: tpu7x:2x2x1
jax: 0.10.0
libtpu: 0.0.40
codegen_flags: <defaults>
</compile_context>

<pallas_src>
import jax
import jax.numpy as jnp
from jax.experimental import pallas as pl
from jax.experimental.pallas import tpu as pltpu


def _prox_l1_kernel(t1_ref, x_ref, o_ref):
    # t1_ref: (1,) f32 scalar in SMEM; x_ref/o_ref: VMEM tiles.
    t1 = t1_ref[0].astype(o_ref.dtype)
    x = x_ref[...]
    o_ref[...] = jnp.maximum(jnp.minimum(x, t1), -t1)


_TARGET_TILE_BYTES = 4 * 1024 * 1024   # ~4 MiB tiles: good on v5e/v6e and v7x (64 MiB VMEM)
_MIN_SPLIT_BYTES = 2 * 1024 * 1024     # above this, force >= 2 tiles (v7x megacore sharing)


def _ceil_to(a: int, m: int) -> int:
    return -(-a // m) * m


def _sublane_multiple(itemsize: int) -> int:
    # Sub-32-bit dtypes pack along sublanes.
    return {4: 8, 2: 16, 1: 32}.get(itemsize, 8)


def _plan(n: int, itemsize: int):
    """Pick (lane, rows, tail, tile_rows, grid, sub) for a flat array of n elements."""
    sub = _sublane_multiple(itemsize)
    lane = 128
    for cand in (1024, 512, 256):          # widest lane that still yields >= sub rows
        if n // cand >= sub:
            lane = cand
            break
    rows = n // lane
    tail = n - rows * lane                 # < lane elements, handled in plain jnp
    if rows == 0:
        return None                        # tiny array: no kernel benefit
    bulk_bytes = rows * lane * itemsize

    target_rows = max(sub, (_TARGET_TILE_BYTES // (lane * itemsize)) // sub * sub)
    if rows <= target_rows:
        if bulk_bytes >= _MIN_SPLIT_BYTES and rows >= 2 * sub:
            tile_r = _ceil_to(pl.cdiv(rows, 2), sub)   # 2 balanced tiles for the 2 TCs
        else:
            tile_r = rows                              # single full-extent block
    else:
        tile_r = target_rows

    grid = pl.cdiv(rows, tile_r)
    # Prefer an even tile count when the grid is small & odd (v7x 2-core balance).
    if 1 < grid <= 8 and grid % 2 == 1 and rows > sub:
        alt = _ceil_to(pl.cdiv(rows, grid + 1), sub)
        if alt >= sub and pl.cdiv(rows, alt) % 2 == 0:
            tile_r = alt
            grid = pl.cdiv(rows, alt)
    return lane, rows, tail, tile_r, grid, sub


def prox_l1(x: jax.Array, t1, *, donate_x: bool = False) -> jax.Array:
    """Elementwise proximal-l1 clamp, matching torch.maximum(torch.minimum(t1, x), -t1)."""
    t1_arr = jnp.asarray(t1)
    out_dtype = jnp.result_type(x, t1_arr)          # torch-style type promotion
    orig_shape = x.shape
    n = x.size
    if n == 0:
        return jnp.zeros(orig_shape, out_dtype)

    xw = x.astype(out_dtype) if x.dtype != out_dtype else x
    itemsize = jnp.dtype(out_dtype).itemsize
    plan = _plan(n, itemsize)
    if plan is None:                                 # < 128 elements: plain jnp clamp
        t1c = t1_arr.astype(out_dtype)
        return jnp.maximum(jnp.minimum(t1c, xw), -t1c).reshape(orig_shape)

    lane, rows, tail, tile_r, grid, _sub = plan
    flat = xw.reshape(-1)
    bulk = (flat[: rows * lane] if tail else flat).reshape(rows, lane)

    t1_smem = t1_arr.astype(jnp.float32).reshape((1,))

    # VMEM budget: ~5x tile (2 in + 2 out double-buffered) + headroom, capped well
    # below v7x's 64 MiB physical VMEM.
    tile_bytes = tile_r * lane * itemsize
    vmem_limit = int(min(48 << 20, max(4 << 20, 5 * tile_bytes + (1 << 20))))

    bulk_out = pl.pallas_call(
        _prox_l1_kernel,
        out_shape=jax.ShapeDtypeStruct((rows, lane), out_dtype),
        grid=(grid,),
        in_specs=[
            pl.BlockSpec(memory_space=pltpu.MemorySpace.SMEM),     # t1 scalar
            pl.BlockSpec((tile_r, lane), lambda i: (i, 0)),        # x tile
        ],
        out_specs=pl.BlockSpec((tile_r, lane), lambda i: (i, 0)),
        compiler_params=pltpu.CompilerParams(
            dimension_semantics=("parallel",),
            vmem_limit_bytes=vmem_limit,
        ),
        input_output_aliases=({1: 0} if donate_x else {}),
    )(t1_smem, bulk)

    if tail:
        t1c = t1_arr.astype(out_dtype)
        tail_out = jnp.maximum(jnp.minimum(t1c, flat[rows * lane:]), -t1c)
        out_flat = jnp.concatenate([bulk_out.reshape(-1), tail_out])
    else:
        out_flat = bulk_out.reshape(-1)
    return out_flat.reshape(orig_shape)


if __name__ == "__main__":
    key = jax.random.PRNGKey(0)

    # Matches torch.nn.Parameter(torch.tensor(1.0)).
    t1 = jnp.float32(1.0)

    def ref_fn(v):
        return jnp.maximum(jnp.minimum(t1, v), -t1)

    # Primary small NCHW-style input (zero-copy, single-block path).
    x = jax.random.normal(key, (2, 4, 16, 16), dtype=jnp.float32) * 3.0
    out = jax.block_until_ready(prox_l1(x, t1))
    assert out.shape == x.shape and out.dtype == x.dtype
    assert jnp.allclose(out, ref_fn(x)), "mismatch (main shape)"

    # Awkward size: lane-divisible bulk via kernel + tiny jnp tail (no pad/slice).
    x_odd = jax.random.normal(jax.random.PRNGKey(1), (3, 5, 7, 11), dtype=jnp.float32) * 3.0
    out_odd = jax.block_until_ready(prox_l1(x_odd, t1))
    assert out_odd.shape == x_odd.shape
    assert jnp.allclose(out_odd, ref_fn(x_odd)), "mismatch (tail path)"

    # Medium array (~2 MiB): exercises the 2-tile split + partial last block.
    x_med = jax.random.normal(jax.random.PRNGKey(2), (520, 1024), dtype=jnp.float32) * 3.0
    out_med = jax.block_until_ready(prox_l1(x_med, t1))
    assert jnp.allclose(out_med, ref_fn(x_med)), "mismatch (split/partial-block path)"

    print("KERNEL_OK")
</pallas_src>

<mosaic_0001>
module attributes {stable_mosaic.version = 11 : i64} {
  func.func @_prox_l1_kernel(%arg0: i32, %arg1: memref<1xf32, #tpu.memory_space<smem>>, %arg2: memref<8x256xf32, #tpu.memory_space<vmem>>, %arg3: memref<8x256xf32, #tpu.memory_space<vmem>>) attributes {dimension_semantics = [#tpu.dimension_semantics<parallel>], iteration_bounds = array<i64: 1>, scalar_prefetch = 0 : i64, scratch_operands = 0 : i64, tpu.core_type = #tpu.core_type<tc>, window_params = [{transform_indices = @transform_0, window_bounds = array<i64: 1>}, {transform_indices = @transform_1, window_bounds = array<i64: 8, 256>}, {transform_indices = @transform_2, window_bounds = array<i64: 8, 256>}]} {
    %c0 = arith.constant 0 : index
    %0 = memref.load %arg1[%c0] : memref<1xf32, #tpu.memory_space<smem>>
    %c0_0 = arith.constant 0 : index
    %c0_1 = arith.constant 0 : index
    %1 = vector.load %arg2[%c0_0, %c0_1] : memref<8x256xf32, #tpu.memory_space<vmem>>, vector<8x256xf32>
    %2 = vector.broadcast %0 : f32 to vector<8x256xf32>
    %3 = arith.minimumf %1, %2 : vector<8x256xf32>
    %cst = arith.constant 0.000000e+00 : f32
    %4 = arith.subf %cst, %0 : f32
    %5 = vector.broadcast %4 : f32 to vector<8x256xf32>
    %6 = arith.maximumf %3, %5 : vector<8x256xf32>
    %c0_2 = arith.constant 0 : index
    %c0_3 = arith.constant 0 : index
    %7 = vector.load %arg3[%c0_2, %c0_3] : memref<8x256xf32, #tpu.memory_space<vmem>>, vector<8x256xf32>
    tpu.vector_store %arg3[%c0_2, %c0_3], %6 {strides = array<i32>} : memref<8x256xf32, #tpu.memory_space<vmem>>, vector<8x256xf32>,
    return
  }
  func.func @transform_0(%arg0: i32) -> i32 {
    %c0_i32 = arith.constant 0 : i32
    %c0_i32_0 = arith.constant 0 : i32
    return %c0_i32 : i32
  }
  func.func @transform_1(%arg0: i32) -> (i32, i32) {
    %c0_i32 = arith.constant 0 : i32
    %c0_i32_0 = arith.constant 0 : i32
    return %arg0, %c0_i32 : i32, i32
  }
  func.func @transform_2(%arg0: i32) -> (i32, i32) {
    %c0_i32 = arith.constant 0 : i32
    %c0_i32_0 = arith.constant 0 : i32
    return %arg0, %c0_i32 : i32, i32
  }
}

</mosaic_0001>

<bundles_post_ra>
// kernel: tpu_custom_call.1
= control target key start
LH: loop header
LB: loop body
LE: loop exit
PB: predicated region body
PF: predicated region fallthrough
CT: control target
= control target key end

     0   :  { %8 = vsyncpa [#allocation4], 0  ;;  %s149_s0 = inlined_call_operand.<no memory space> [shape: f32[1], index: 0, kind: input, shape index: {}]   ;;  %s150_s1 = inlined_call_operand.hbm [shape: f32[8,256], index: 1, kind: input, shape index: {}]   ;;  %s151_s2 = inlined_call_operand.hbm [shape: f32[8,256], index: 2, kind: output, shape index: {}]  }
   0x1   :  { %9 = vsyncpa [#allocation5], 0  ;;  %s102_s9 = smov [#allocation3]   ;;  %s54_s13 = scalar_lea.hbm %s150_s1, 256 }
   0x2   :  { %s18_s10 = sshll.u32 %s102_s9, 4  ;;  %p55_p0 = scmp.ne.s32.totalorder %s150_s1, %s54_s13  ;;  %s19_s10 = int_to_ptr.vmem [resolvable:$true] %s18_s10 }
   0x3   :  { %p58_p1 = scmp.lt.u32.totalorder %s54_s13, %s150_s1 }
   0x5   :  { %p60_p2 = pnand %p58_p1, %p55_p0 }
   0x7   :  { %63 = shalt.err (!%p60_p2)
}
   0x8   :  { %s64_s18 = scalar_lea.vmem %s19_s10, 256  ;;  %p69_p4 = scmp.lt.s32.totalorder %s19_s10, %s19_s10 }
   0x9   :  { %p65_p3 = scmp.ne.s32.totalorder %s19_s10, %s64_s18  ;;  %p70_p5 = scmp.lt.s32.totalorder %s64_s18, %s64_s18 }
   0xb   :  { %p71_p6 = por %p70_p5, %p69_p4 }
   0xd   :  { %p72_p7 = pnand %p71_p6, %p65_p3 }
   0xf   :  { %75 = shalt.err (!%p72_p7)
}
  0x10   :  { %21 = dma.hbm_to_vmem [thread:$0]  %s150_s1, 256, %s19_s10, [#allocation4]  }
  0x11   :  { %98 = dma.done.wait [#allocation4], 256  }
  0x12   :  { %99 = vsyncadd [#allocation4], 4294967040  ;;  %s31_s23 = ssub.f32 0.0, %s149_s0  ;;  %v28_v0 = vstv %s149_s0  ;;  %v26_v1 = vld [vmem:[#allocation3] sm:$0xff]  ;;  %v27_v3 = vld [vmem:[#allocation3 + $0x8] sm:$0xff]  ;;  %s103_s26 = smov [#allocation6]  }
  0x13   :  { %s43_s27 = sshll.u32 %s103_s26, 4  ;;  %v29_v4 = vmin.f32 %v26_v1, %v28_v0  ;;  %v30_v5 = vmin.f32 %v27_v3, %v28_v0  ;;  %s44_s27 = int_to_ptr.vmem [resolvable:$true] %s43_s27 }
  0x14   :  { %v32_v2 = vstv %s31_s23  ;;  %s76_s1 = scalar_lea.vmem %s44_s27, 256  ;;  %p81_p9 = scmp.lt.s32.totalorder %s44_s27, %s44_s27 }
  0x15   :  { %v33_v6 = vmax.f32 %v29_v4, %v32_v2  ;;  %v34_v7 = vmax.f32 %v30_v5, %v32_v2  ;;  %p77_p8 = scmp.ne.s32.totalorder %s44_s27, %s76_s1  ;;  %p82_p10 = scmp.lt.s32.totalorder %s76_s1, %s76_s1 }
  0x17   :  { %35 = vst [vmem:[#allocation6] sm:$0xff] %v33_v6  ;;  %36 = vst [vmem:[#allocation6 + $0x8] sm:$0xff] %v34_v7  ;;  %p83_p11 = por %p82_p10, %p81_p9 }
  0x19   :  { %p84_p12 = pnand %p83_p11, %p77_p8 }
  0x1b   :  { %87 = shalt.err (!%p84_p12)
}
  0x1c   :  { %s88_s29 = scalar_lea.hbm %s151_s2, 256 }
  0x1d   :  { %p89_p13 = scmp.ne.s32.totalorder %s151_s2, %s88_s29  ;;  %p92_p0 = scmp.lt.u32.totalorder %s88_s29, %s151_s2 }
  0x1f   :  { %p94_p1 = pnand %p92_p0, %p89_p13 }
  0x21   :  { %97 = shalt.err (!%p94_p1)
}
  0x22   :  { %46 = dma.vmem_to_hbm [thread:$0]  %s44_s27, 256, %s151_s2, [#allocation5]  }
  0x23   :  { %100 = dma.done.wait [#allocation5], 256  }
  0x24   :  { %101 = vsyncadd [#allocation5], 4294967040 }
  0x25   :  { %50 = vsyncpa [#allocation4], 1 }
  0x26   :  { %51 = vsyncpa [#allocation5], 1 }

</bundles_post_ra>
